<compile_context>
chip_gen: v7x
topology: tpu7x:2x2x1
jax: 0.10.0
libtpu: 0.0.40
codegen_flags: <defaults>
</compile_context>

<pallas_src>
import math
import functools

import jax
import jax.numpy as jnp
from jax import lax
from jax.experimental import pallas as pl
from jax.experimental.pallas import tpu as pltpu


_NEG_INF = -1e30              # finite "minus infinity": avoids inf-inf NaNs in the running max
_VMEM_LIMIT = 48 * 1024 * 1024  # > 16/32 MiB scoped defaults, < v7x 64 MiB physical


def _round_up(v, m):
    return ((v + m - 1) // m) * m


def _seq_tile(s, target):
    """Sequence tile: multiple of 8, <= target, with bounded padding (never falls back
    to a full-S block)."""
    s8 = _round_up(s, 8)
    if s8 <= target:
        return s8
    n_tiles = -(-s8 // target)
    return _round_up(-(-s // n_tiles), 8)


# ---------------------------------------------------------------------------
# Kernel 1: tiled dense linear  y = x @ W + b   (used for the output projection)
#   grid = (M/tm, N/tn, K/tk); f32 VMEM accumulator; K is the reduction axis.
# ---------------------------------------------------------------------------
def _linear_kernel(x_ref, w_ref, b_ref, o_ref, acc_ref):
    @pl.when(pl.program_id(2) == 0)
    def _():
        acc_ref[...] = jnp.zeros_like(acc_ref)

    acc_ref[...] += jnp.dot(x_ref[...], w_ref[...],
                            preferred_element_type=jnp.float32)

    @pl.when(pl.program_id(2) == pl.num_programs(2) - 1)
    def _():
        o_ref[...] = (acc_ref[...] + b_ref[...]).astype(o_ref.dtype)


def linear(x2d, w, b, *, out_dtype=None, tm=512, tn=256, tk=512):
    M, K = x2d.shape
    K2, N = w.shape
    assert K == K2 and b.shape == (N,)
    out_dtype = x2d.dtype if out_dtype is None else out_dtype

    # Tile sizes: sublane axis multiple of 8, lane axes multiples of 128.
    tm = min(tm, _round_up(M, 8))
    tn = min(tn, _round_up(N, 128))
    tk = min(tk, _round_up(K, 128))
    Mp, Np, Kp = _round_up(M, tm), _round_up(N, tn), _round_up(K, tk)

    xp = x2d if (Mp, Kp) == (M, K) else jnp.pad(x2d, ((0, Mp - M), (0, Kp - K)))
    wp = w if (Kp, Np) == (K, N) else jnp.pad(w, ((0, Kp - K), (0, Np - N)))
    bp = (b if Np == N else jnp.pad(b, (0, Np - N))).reshape(1, Np)

    out = pl.pallas_call(
        _linear_kernel,
        out_shape=jax.ShapeDtypeStruct((Mp, Np), out_dtype),
        grid_spec=pltpu.PrefetchScalarGridSpec(
            num_scalar_prefetch=0,
            grid=(Mp // tm, Np // tn, Kp // tk),
            in_specs=[
                pl.BlockSpec((tm, tk), lambda i, j, k: (i, k)),
                pl.BlockSpec((tk, tn), lambda i, j, k: (k, j)),
                pl.BlockSpec((1, tn), lambda i, j, k: (0, j)),
            ],
            out_specs=pl.BlockSpec((tm, tn), lambda i, j, k: (i, j)),
            scratch_shapes=[pltpu.VMEM((tm, tn), jnp.float32)],
        ),
        compiler_params=pltpu.CompilerParams(
            dimension_semantics=("parallel", "parallel", "arbitrary"),
            vmem_limit_bytes=_VMEM_LIMIT),
    )(xp, wp, bp)

    if (Mp, Np) != (M, N):
        out = out[:M, :N]
    return out


# ---------------------------------------------------------------------------
# Kernel 2: fused QKV projection — one pass over x, three f32 accumulators,
#   three separate (bf16) outputs so attention can stream narrow q/k/v blocks.
# ---------------------------------------------------------------------------
def _qkv_linear_kernel(x_ref, wq_ref, wk_ref, wv_ref, bq_ref, bk_ref, bv_ref,
                       q_ref, k_ref, v_ref, qacc_ref, kacc_ref, vacc_ref):
    @pl.when(pl.program_id(2) == 0)
    def _():
        qacc_ref[...] = jnp.zeros_like(qacc_ref)
        kacc_ref[...] = jnp.zeros_like(kacc_ref)
        vacc_ref[...] = jnp.zeros_like(vacc_ref)

    x = x_ref[...]
    qacc_ref[...] += jnp.dot(x, wq_ref[...], preferred_element_type=jnp.float32)
    kacc_ref[...] += jnp.dot(x, wk_ref[...], preferred_element_type=jnp.float32)
    vacc_ref[...] += jnp.dot(x, wv_ref[...], preferred_element_type=jnp.float32)

    @pl.when(pl.program_id(2) == pl.num_programs(2) - 1)
    def _():
        q_ref[...] = (qacc_ref[...] + bq_ref[...]).astype(q_ref.dtype)
        k_ref[...] = (kacc_ref[...] + bk_ref[...]).astype(k_ref.dtype)
        v_ref[...] = (vacc_ref[...] + bv_ref[...]).astype(v_ref.dtype)


def qkv_projection(x2d, wq, wk, wv, bq, bk, bv, *, out_dtype,
                   tm=512, tn=256, tk=512):
    M, K = x2d.shape
    N = wq.shape[1]

    tm = min(tm, _round_up(M, 8))
    tn = min(tn, _round_up(N, 128))
    tk = min(tk, _round_up(K, 128))
    Mp, Np, Kp = _round_up(M, tm), _round_up(N, tn), _round_up(K, tk)

    xp = x2d if (Mp, Kp) == (M, K) else jnp.pad(x2d, ((0, Mp - M), (0, Kp - K)))

    def pw(w):
        return w if (Kp, Np) == (K, N) else jnp.pad(w, ((0, Kp - K), (0, Np - N)))

    def pb(b):
        return (b if Np == N else jnp.pad(b, (0, Np - N))).reshape(1, Np)

    x_spec = pl.BlockSpec((tm, tk), lambda i, j, k: (i, k))
    w_spec = pl.BlockSpec((tk, tn), lambda i, j, k: (k, j))
    b_spec = pl.BlockSpec((1, tn), lambda i, j, k: (0, j))
    o_spec = pl.BlockSpec((tm, tn), lambda i, j, k: (i, j))

    q, k, v = pl.pallas_call(
        _qkv_linear_kernel,
        out_shape=[jax.ShapeDtypeStruct((Mp, Np), out_dtype)] * 3,
        grid_spec=pltpu.PrefetchScalarGridSpec(
            num_scalar_prefetch=0,
            grid=(Mp // tm, Np // tn, Kp // tk),
            in_specs=[x_spec, w_spec, w_spec, w_spec, b_spec, b_spec, b_spec],
            out_specs=[o_spec, o_spec, o_spec],
            scratch_shapes=[pltpu.VMEM((tm, tn), jnp.float32)] * 3,
        ),
        compiler_params=pltpu.CompilerParams(
            dimension_semantics=("parallel", "parallel", "arbitrary"),
            vmem_limit_bytes=_VMEM_LIMIT),
    )(xp, pw(wq), pw(wk), pw(wv), pb(bq), pb(bk), pb(bv))

    if (Mp, Np) != (M, N):
        q, k, v = q[:M, :N], k[:M, :N], v[:M, :N]
    return q, k, v


# ---------------------------------------------------------------------------
# Kernel 3: flash-style multi-head attention over separate q/k/v slabs.
#   grid = (B, Sp/tq, Sp/tkv), KV axis innermost ("arbitrary").
#   Per-head running max / sum / accumulator live in f32 VMEM scratch; the output
#   is a lane-dense (B, Sp, D) slab written in >=128-lane head chunks.
# ---------------------------------------------------------------------------
def _mha_kernel(q_ref, k_ref, v_ref, o_ref, m_ref, l_ref, acc_ref, *,
                n_heads, d_head, causal, seq_len, padded, tq, tkv):
    qi = pl.program_id(1)
    ki = pl.program_id(2)

    @pl.when(ki == 0)
    def _():
        m_ref[...] = jnp.full_like(m_ref, _NEG_INF)
        l_ref[...] = jnp.zeros_like(l_ref)
        acc_ref[...] = jnp.zeros_like(acc_ref)

    def compute():
        q = q_ref[0]    # (tq,  D) bf16, already scaled by 1/sqrt(d_head)
        k = k_ref[0]    # (tkv, D) bf16
        v = v_ref[0]    # (tkv, D) bf16

        mask = None
        if causal or padded:
            col = ki * tkv + lax.broadcasted_iota(jnp.int32, (tq, tkv), 1)
        if causal:
            row = qi * tq + lax.broadcasted_iota(jnp.int32, (tq, tkv), 0)
            mask = col > row
        if padded:
            pad_mask = col >= seq_len
            mask = pad_mask if mask is None else (mask | pad_mask)

        for h in range(n_heads):
            sl = slice(h * d_head, (h + 1) * d_head)
            # q @ k^T without materializing the transpose (contract last dims).
            s = lax.dot_general(q[:, sl], k[:, sl], (((1,), (1,)), ((), ())),
                                preferred_element_type=jnp.float32)  # (tq, tkv)
            if mask is not None:
                s = jnp.where(mask, _NEG_INF, s)

            m_prev = m_ref[h]                                        # (tq, 1)
            m_new = jnp.maximum(m_prev, jnp.max(s, axis=-1, keepdims=True))
            alpha = jnp.exp(m_prev - m_new)
            p = jnp.exp(s - m_new)
            l_ref[h] = alpha * l_ref[h] + jnp.sum(p, axis=-1, keepdims=True)
            acc_ref[h] = alpha * acc_ref[h] + lax.dot_general(
                p.astype(v.dtype), v[:, sl], (((1,), (0,)), ((), ())),
                preferred_element_type=jnp.float32)
            m_ref[h] = m_new

    if causal:
        # Skip fully-masked kv tiles (first column of this kv tile is beyond the last
        # row of this q tile).  Safe with finite _NEG_INF because kv tile 0 always
        # contains unmasked columns for every q row, so the running stats are seeded
        # from real scores before any skipping can occur.
        pl.when(ki * tkv <= qi * tq + tq - 1)(compute)
    else:
        compute()

    if d_head >= 128:
        heads_per_store = 1
    else:
        heads_per_store = min(n_heads, max(1, 128 // d_head))
        while n_heads % heads_per_store:
            heads_per_store -= 1

    @pl.when(ki == pl.num_programs(2) - 1)
    def _():
        # Normalize and store in lane-aligned head chunks (avoids one huge concat of
        # all heads' f32 accumulators while keeping stores lane-dense).
        for h0 in range(0, n_heads, heads_per_store):
            parts = [acc_ref[h] * pl.reciprocal(l_ref[h], approx=True)
                     for h in range(h0, h0 + heads_per_store)]
            blk = parts[0] if heads_per_store == 1 else jnp.concatenate(parts, axis=-1)
            lo, hi = h0 * d_head, (h0 + heads_per_store) * d_head
            o_ref[0, :, lo:hi] = blk.astype(o_ref.dtype)


def attention(q, k, v, *, n_heads, causal, out_dtype=None,
              tq_target=256, tkv_target=256):
    B, S, D = q.shape
    assert D % n_heads == 0
    d_head = D // n_heads
    out_dtype = q.dtype if out_dtype is None else out_dtype

    tq = _seq_tile(S, tq_target)
    tkv = _seq_tile(S, tkv_target)
    Sp = _round_up(S, math.lcm(tq, tkv))
    padded = Sp != S
    if padded:
        pad = ((0, 0), (0, Sp - S), (0, 0))
        q, k, v = jnp.pad(q, pad), jnp.pad(k, pad), jnp.pad(v, pad)

    if causal:
        def kv_index_map(b, qi, ki):
            # Clamp so fully-masked (skipped) kv tiles re-use the already-resident
            # block instead of issuing a fresh DMA.
            return (b, jnp.minimum(ki, (qi * tq + tq - 1) // tkv), 0)
    else:
        def kv_index_map(b, qi, ki):
            return (b, ki, 0)

    kern = functools.partial(
        _mha_kernel, n_heads=n_heads, d_head=d_head, causal=causal,
        seq_len=S, padded=padded, tq=tq, tkv=tkv)

    # TODO(synk): sweep pipeline_mode=pl.Buffered(3) on the k/v specs if DMA waits are
    # still exposed in the bundle (revert to 2 if VMEM-tight on v7x).
    out = pl.pallas_call(
        kern,
        out_shape=jax.ShapeDtypeStruct((B, Sp, D), out_dtype),
        grid_spec=pltpu.PrefetchScalarGridSpec(
            num_scalar_prefetch=0,
            grid=(B, Sp // tq, Sp // tkv),
            in_specs=[
                # q tile stays resident across the kv axis
                pl.BlockSpec((1, tq, D), lambda b, qi, ki: (b, qi, 0)),
                # streamed narrow k / v tiles
                pl.BlockSpec((1, tkv, D), kv_index_map),
                pl.BlockSpec((1, tkv, D), kv_index_map),
            ],
            out_specs=pl.BlockSpec((1, tq, D), lambda b, qi, ki: (b, qi, 0)),
            scratch_shapes=[
                pltpu.VMEM((n_heads, tq, 1), jnp.float32),       # running max
                pltpu.VMEM((n_heads, tq, 1), jnp.float32),       # running sum
                pltpu.VMEM((n_heads, tq, d_head), jnp.float32),  # accumulator
            ],
        ),
        compiler_params=pltpu.CompilerParams(
            dimension_semantics=("parallel", "parallel", "arbitrary"),
            vmem_limit_bytes=_VMEM_LIMIT),
    )(q, k, v)

    if padded:
        out = out[:, :S, :]
    return out


# ---------------------------------------------------------------------------
# Full SelfAttention forward.
# ---------------------------------------------------------------------------
def self_attention(x, params, n_heads, causal_mask=False, *,
                   qkv_dtype=jnp.bfloat16, tq_target=256, tkv_target=256):
    B, S, D = x.shape
    assert D % n_heads == 0
    d_head = D // n_heads
    scale = 1.0 / math.sqrt(d_head)

    w_in, b_in = params["w_in"], params["b_in"]
    # Fold the softmax scale into the Q projection (hoists the per-kv-step q*scale mul).
    wq, wk, wv = w_in[:, :D] * scale, w_in[:, D:2 * D], w_in[:, 2 * D:]
    bq, bk, bv = b_in[:D] * scale, b_in[D:2 * D], b_in[2 * D:]

    # Fused QKV projection: one pass over x, three bf16 activation slabs.
    q, k, v = qkv_projection(x.reshape(B * S, D), wq, wk, wv, bq, bk, bv,
                             out_dtype=qkv_dtype)
    q = q.reshape(B, S, D)   # contiguous reshapes — no data movement
    k = k.reshape(B, S, D)
    v = v.reshape(B, S, D)

    # Flash-style multi-head attention (bf16 MXU inputs, f32 accumulation).
    o = attention(q, k, v, n_heads=n_heads, causal=causal_mask,
                  out_dtype=x.dtype, tq_target=tq_target, tkv_target=tkv_target)

    # Output projection (tiled Pallas matmul, f32).
    out = linear(o.reshape(B * S, D), params["w_out"], params["b_out"])
    return out.reshape(B, S, D)


def init_params(key, d_embed):
    k1, k2, k3, k4 = jax.random.split(key, 4)
    bound = 1.0 / math.sqrt(d_embed)
    # weights stored as (in_features, out_features)
    w_in = jax.random.uniform(k1, (d_embed, 3 * d_embed), jnp.float32, -bound, bound)
    b_in = jax.random.uniform(k2, (3 * d_embed,), jnp.float32, -bound, bound)
    w_out = jax.random.uniform(k3, (d_embed, d_embed), jnp.float32, -bound, bound)
    b_out = jax.random.uniform(k4, (d_embed,), jnp.float32, -bound, bound)
    return {"w_in": w_in, "b_in": b_in, "w_out": w_out, "b_out": b_out}


def _reference(x, p, n_heads, causal):
    B, S, D = x.shape
    dh = D // n_heads
    qkv = x @ p["w_in"] + p["b_in"]
    q, k, v = jnp.split(qkv, 3, axis=-1)

    def sh(t):
        return t.reshape(B, S, n_heads, dh).transpose(0, 2, 1, 3)

    q, k, v = sh(q), sh(k), sh(v)
    w = jnp.einsum("bhqd,bhkd->bhqk", q, k) / math.sqrt(dh)
    if causal:
        row = jnp.arange(S)[:, None]
        col = jnp.arange(S)[None, :]
        w = jnp.where(col > row, -jnp.inf, w)
    w = jax.nn.softmax(w, axis=-1)
    o = jnp.einsum("bhqk,bhkd->bhqd", w, v)
    o = o.transpose(0, 2, 1, 3).reshape(B, S, D)
    return o @ p["w_out"] + p["b_out"]


if __name__ == "__main__":
    key = jax.random.PRNGKey(0)
    kp, kx1, kx2 = jax.random.split(key, 3)

    D, H = 32, 4
    params = init_params(kp, D)

    # (B, S, tq_target, tkv_target, key):
    #   * tile-aligned single-kv-tile case
    #   * S=13 with tiny tiles: exercises seq padding, multi-kv-tile online softmax,
    #     and the causal fully-masked-tile skip + clamped kv index_map.
    configs = [
        (2, 8, 256, 256, kx1),
        (2, 13, 8, 8, kx2),
    ]

    for B, S, tqt, tkvt, kx in configs:
        x = jax.random.normal(kx, (B, S, D), jnp.float32)
        for causal in (False, True):
            out = self_attention(x, params, n_heads=H, causal_mask=causal,
                                 tq_target=tqt, tkv_target=tkvt)
            out = jax.block_until_ready(out)
            expected = _reference(x, params, H, causal)
            assert out.shape == (B, S, D)
            err = float(jnp.max(jnp.abs(out - expected)))
            # tolerance covers bf16 q/k/v activations + pl.reciprocal(approx=True)
            assert jnp.allclose(out, expected, atol=2e-2, rtol=2e-2), \
                f"mismatch (B={B}, S={S}, causal={causal}), max abs err = {err}"

    print("KERNEL_OK")
</pallas_src>

<mosaic_0001>
module attributes {stable_mosaic.version = 11 : i64} {
  func.func @_qkv_linear_kernel(%arg0: i32, %arg1: i32, %arg2: i32, %arg3: memref<16x128xf32, #tpu.memory_space<vmem>>, %arg4: memref<128x128xf32, #tpu.memory_space<vmem>>, %arg5: memref<128x128xf32, #tpu.memory_space<vmem>>, %arg6: memref<128x128xf32, #tpu.memory_space<vmem>>, %arg7: memref<1x128xf32, #tpu.memory_space<vmem>>, %arg8: memref<1x128xf32, #tpu.memory_space<vmem>>, %arg9: memref<1x128xf32, #tpu.memory_space<vmem>>, %arg10: memref<16x128xbf16, #tpu.memory_space<vmem>>, %arg11: memref<16x128xbf16, #tpu.memory_space<vmem>>, %arg12: memref<16x128xbf16, #tpu.memory_space<vmem>>, %arg13: memref<16x128xf32, #tpu.memory_space<vmem>>, %arg14: memref<16x128xf32, #tpu.memory_space<vmem>>, %arg15: memref<16x128xf32, #tpu.memory_space<vmem>>) attributes {dimension_semantics = [#tpu.dimension_semantics<parallel>, #tpu.dimension_semantics<parallel>, #tpu.dimension_semantics<arbitrary>], iteration_bounds = array<i64: 1, 1, 1>, scalar_prefetch = 0 : i64, scratch_operands = 3 : i64, tpu.core_type = #tpu.core_type<tc>, window_params = [{transform_indices = @transform_0, window_bounds = array<i64: 16, 128>}, {transform_indices = @transform_1, window_bounds = array<i64: 128, 128>}, {transform_indices = @transform_2, window_bounds = array<i64: 128, 128>}, {transform_indices = @transform_3, window_bounds = array<i64: 128, 128>}, {transform_indices = @transform_4, window_bounds = array<i64: 1, 128>}, {transform_indices = @transform_5, window_bounds = array<i64: 1, 128>}, {transform_indices = @transform_6, window_bounds = array<i64: 1, 128>}, {transform_indices = @transform_7, window_bounds = array<i64: 16, 128>}, {transform_indices = @transform_8, window_bounds = array<i64: 16, 128>}, {transform_indices = @transform_9, window_bounds = array<i64: 16, 128>}]} {
    %c0_i32 = arith.constant 0 : i32
    %0 = arith.cmpi eq, %arg2, %c0_i32 : i32
    %1 = arith.extui %0 : i1 to i32
    %c0_i32_0 = arith.constant 0 : i32
    %2 = arith.cmpi ne, %1, %c0_i32_0 : i32
    scf.if %2 {
      %cst_24 = arith.constant 0.000000e+00 : f32
      %22 = vector.broadcast %cst_24 : f32 to vector<16x128xf32>
      %c0_25 = arith.constant 0 : index
      %c0_26 = arith.constant 0 : index
      %23 = vector.load %arg13[%c0_25, %c0_26] : memref<16x128xf32, #tpu.memory_space<vmem>>, vector<16x128xf32>
      tpu.vector_store %arg13[%c0_25, %c0_26], %22 {strides = array<i32>} : memref<16x128xf32, #tpu.memory_space<vmem>>, vector<16x128xf32>,
      %cst_27 = arith.constant 0.000000e+00 : f32
      %24 = vector.broadcast %cst_27 : f32 to vector<16x128xf32>
      %c0_28 = arith.constant 0 : index
      %c0_29 = arith.constant 0 : index
      %25 = vector.load %arg14[%c0_28, %c0_29] : memref<16x128xf32, #tpu.memory_space<vmem>>, vector<16x128xf32>
      tpu.vector_store %arg14[%c0_28, %c0_29], %24 {strides = array<i32>} : memref<16x128xf32, #tpu.memory_space<vmem>>, vector<16x128xf32>,
      %cst_30 = arith.constant 0.000000e+00 : f32
      %26 = vector.broadcast %cst_30 : f32 to vector<16x128xf32>
      %c0_31 = arith.constant 0 : index
      %c0_32 = arith.constant 0 : index
      %27 = vector.load %arg15[%c0_31, %c0_32] : memref<16x128xf32, #tpu.memory_space<vmem>>, vector<16x128xf32>
      tpu.vector_store %arg15[%c0_31, %c0_32], %26 {strides = array<i32>} : memref<16x128xf32, #tpu.memory_space<vmem>>, vector<16x128xf32>,
    } else {
    }
    %c0 = arith.constant 0 : index
    %c0_1 = arith.constant 0 : index
    %3 = vector.load %arg3[%c0, %c0_1] : memref<16x128xf32, #tpu.memory_space<vmem>>, vector<16x128xf32>
    %c0_2 = arith.constant 0 : index
    %c0_3 = arith.constant 0 : index
    %4 = vector.load %arg13[%c0_2, %c0_3] : memref<16x128xf32, #tpu.memory_space<vmem>>, vector<16x128xf32>
    %c0_4 = arith.constant 0 : index
    %c0_5 = arith.constant 0 : index
    %5 = vector.load %arg4[%c0_4, %c0_5] : memref<128x128xf32, #tpu.memory_space<vmem>>, vector<128x128xf32>
    %cst = arith.constant dense<0.000000e+00> : vector<16x128xf32>
    %6 = tpu.matmul %3, %5, %cst {dimension_numbers = #tpu.dot_dimension_numbers<[1], [0], [0], [1], [0, 0, 1, 1], [], []>} : vector<16x128xf32>, vector<128x128xf32>, vector<16x128xf32> -> vector<16x128xf32>
    %7 = arith.addf %4, %6 : vector<16x128xf32>
    %c0_6 = arith.constant 0 : index
    %c0_7 = arith.constant 0 : index
    %8 = vector.load %arg13[%c0_6, %c0_7] : memref<16x128xf32, #tpu.memory_space<vmem>>, vector<16x128xf32>
    tpu.vector_store %arg13[%c0_6, %c0_7], %7 {strides = array<i32>} : memref<16x128xf32, #tpu.memory_space<vmem>>, vector<16x128xf32>,
    %c0_8 = arith.constant 0 : index
    %c0_9 = arith.constant 0 : index
    %9 = vector.load %arg14[%c0_8, %c0_9] : memref<16x128xf32, #tpu.memory_space<vmem>>, vector<16x128xf32>
    %c0_10 = arith.constant 0 : index
    %c0_11 = arith.constant 0 : index
    %10 = vector.load %arg5[%c0_10, %c0_11] : memref<128x128xf32, #tpu.memory_space<vmem>>, vector<128x128xf32>
    %cst_12 = arith.constant dense<0.000000e+00> : vector<16x128xf32>
    %11 = tpu.matmul %3, %10, %cst_12 {dimension_numbers = #tpu.dot_dimension_numbers<[1], [0], [0], [1], [0, 0, 1, 1], [], []>} : vector<16x128xf32>, vector<128x128xf32>, vector<16x128xf32> -> vector<16x128xf32>
    %12 = arith.addf %9, %11 : vector<16x128xf32>
    %c0_13 = arith.constant 0 : index
    %c0_14 = arith.constant 0 : index
    %13 = vector.load %arg14[%c0_13, %c0_14] : memref<16x128xf32, #tpu.memory_space<vmem>>, vector<16x128xf32>
    tpu.vector_store %arg14[%c0_13, %c0_14], %12 {strides = array<i32>} : memref<16x128xf32, #tpu.memory_space<vmem>>, vector<16x128xf32>,
    %c0_15 = arith.constant 0 : index
    %c0_16 = arith.constant 0 : index
    %14 = vector.load %arg15[%c0_15, %c0_16] : memref<16x128xf32, #tpu.memory_space<vmem>>, vector<16x128xf32>
    %c0_17 = arith.constant 0 : index
    %c0_18 = arith.constant 0 : index
    %15 = vector.load %arg6[%c0_17, %c0_18] : memref<128x128xf32, #tpu.memory_space<vmem>>, vector<128x128xf32>
    %cst_19 = arith.constant dense<0.000000e+00> : vector<16x128xf32>
    %16 = tpu.matmul %3, %15, %cst_19 {dimension_numbers = #tpu.dot_dimension_numbers<[1], [0], [0], [1], [0, 0, 1, 1], [], []>} : vector<16x128xf32>, vector<128x128xf32>, vector<16x128xf32> -> vector<16x128xf32>
    %17 = arith.addf %14, %16 : vector<16x128xf32>
    %c0_20 = arith.constant 0 : index
    %c0_21 = arith.constant 0 : index
    %18 = vector.load %arg15[%c0_20, %c0_21] : memref<16x128xf32, #tpu.memory_space<vmem>>, vector<16x128xf32>
    tpu.vector_store %arg15[%c0_20, %c0_21], %17 {strides = array<i32>} : memref<16x128xf32, #tpu.memory_space<vmem>>, vector<16x128xf32>,
    %c0_i32_22 = arith.constant 0 : i32
    %19 = arith.cmpi eq, %arg2, %c0_i32_22 : i32
    %20 = arith.extui %19 : i1 to i32
    %c0_i32_23 = arith.constant 0 : i32
    %21 = arith.cmpi ne, %20, %c0_i32_23 : i32
    scf.if %21 {
      %c0_24 = arith.constant 0 : index
      %c0_25 = arith.constant 0 : index
      %22 = vector.load %arg13[%c0_24, %c0_25] : memref<16x128xf32, #tpu.memory_space<vmem>>, vector<16x128xf32>
      %c0_26 = arith.constant 0 : index
      %c0_27 = arith.constant 0 : index
      %23 = vector.load %arg7[%c0_26, %c0_27] : memref<1x128xf32, #tpu.memory_space<vmem>>, vector<1x128xf32>
      %24 = vector.broadcast %23 : vector<1x128xf32> to vector<16x128xf32>
      %25 = arith.addf %22, %24 : vector<16x128xf32>
      %26 = arith.truncf %25 : vector<16x128xf32> to vector<16x128xbf16>
      %c0_28 = arith.constant 0 : index
      %c0_29 = arith.constant 0 : index
      %27 = vector.load %arg10[%c0_28, %c0_29] : memref<16x128xbf16, #tpu.memory_space<vmem>>, vector<16x128xbf16>
      tpu.vector_store %arg10[%c0_28, %c0_29], %26 {strides = array<i32>} : memref<16x128xbf16, #tpu.memory_space<vmem>>, vector<16x128xbf16>,
      %c0_30 = arith.constant 0 : index
      %c0_31 = arith.constant 0 : index
      %28 = vector.load %arg14[%c0_30, %c0_31] : memref<16x128xf32, #tpu.memory_space<vmem>>, vector<16x128xf32>
      %c0_32 = arith.constant 0 : index
      %c0_33 = arith.constant 0 : index
      %29 = vector.load %arg8[%c0_32, %c0_33] : memref<1x128xf32, #tpu.memory_space<vmem>>, vector<1x128xf32>
      %30 = vector.broadcast %29 : vector<1x128xf32> to vector<16x128xf32>
      %31 = arith.addf %28, %30 : vector<16x128xf32>
      %32 = arith.truncf %31 : vector<16x128xf32> to vector<16x128xbf16>
      %c0_34 = arith.constant 0 : index
      %c0_35 = arith.constant 0 : index
      %33 = vector.load %arg11[%c0_34, %c0_35] : memref<16x128xbf16, #tpu.memory_space<vmem>>, vector<16x128xbf16>
      tpu.vector_store %arg11[%c0_34, %c0_35], %32 {strides = array<i32>} : memref<16x128xbf16, #tpu.memory_space<vmem>>, vector<16x128xbf16>,
      %c0_36 = arith.constant 0 : index
      %c0_37 = arith.constant 0 : index
      %34 = vector.load %arg15[%c0_36, %c0_37] : memref<16x128xf32, #tpu.memory_space<vmem>>, vector<16x128xf32>
      %c0_38 = arith.constant 0 : index
      %c0_39 = arith.constant 0 : index
      %35 = vector.load %arg9[%c0_38, %c0_39] : memref<1x128xf32, #tpu.memory_space<vmem>>, vector<1x128xf32>
      %36 = vector.broadcast %35 : vector<1x128xf32> to vector<16x128xf32>
      %37 = arith.addf %34, %36 : vector<16x128xf32>
      %38 = arith.truncf %37 : vector<16x128xf32> to vector<16x128xbf16>
      %c0_40 = arith.constant 0 : index
      %c0_41 = arith.constant 0 : index
      %39 = vector.load %arg12[%c0_40, %c0_41] : memref<16x128xbf16, #tpu.memory_space<vmem>>, vector<16x128xbf16>
      tpu.vector_store %arg12[%c0_40, %c0_41], %38 {strides = array<i32>} : memref<16x128xbf16, #tpu.memory_space<vmem>>, vector<16x128xbf16>,
    } else {
    }
    return
  }
  func.func @transform_0(%arg0: i32, %arg1: i32, %arg2: i32) -> (i32, i32) {
    %c0_i32 = arith.constant 0 : i32
    return %arg0, %arg2 : i32, i32
  }
  func.func @transform_1(%arg0: i32, %arg1: i32, %arg2: i32) -> (i32, i32) {
    %c0_i32 = arith.constant 0 : i32
    return %arg2, %arg1 : i32, i32
  }
  func.func @transform_2(%arg0: i32, %arg1: i32, %arg2: i32) -> (i32, i32) {
    %c0_i32 = arith.constant 0 : i32
    return %arg2, %arg1 : i32, i32
  }
  func.func @transform_3(%arg0: i32, %arg1: i32, %arg2: i32) -> (i32, i32) {
    %c0_i32 = arith.constant 0 : i32
    return %arg2, %arg1 : i32, i32
  }
  func.func @transform_4(%arg0: i32, %arg1: i32, %arg2: i32) -> (i32, i32) {
    %c0_i32 = arith.constant 0 : i32
    %c0_i32_0 = arith.constant 0 : i32
    return %c0_i32, %arg1 : i32, i32
  }
  func.func @transform_5(%arg0: i32, %arg1: i32, %arg2: i32) -> (i32, i32) {
    %c0_i32 = arith.constant 0 : i32
    %c0_i32_0 = arith.constant 0 : i32
    return %c0_i32, %arg1 : i32, i32
  }
  func.func @transform_6(%arg0: i32, %arg1: i32, %arg2: i32) -> (i32, i32) {
    %c0_i32 = arith.constant 0 : i32
    %c0_i32_0 = arith.constant 0 : i32
    return %c0_i32, %arg1 : i32, i32
  }
  func.func @transform_7(%arg0: i32, %arg1: i32, %arg2: i32) -> (i32, i32) {
    %c0_i32 = arith.constant 0 : i32
    return %arg0, %arg1 : i32, i32
  }
  func.func @transform_8(%arg0: i32, %arg1: i32, %arg2: i32) -> (i32, i32) {
    %c0_i32 = arith.constant 0 : i32
    return %arg0, %arg1 : i32, i32
  }
  func.func @transform_9(%arg0: i32, %arg1: i32, %arg2: i32) -> (i32, i32) {
    %c0_i32 = arith.constant 0 : i32
    return %arg0, %arg1 : i32, i32
  }
}

</mosaic_0001>

<bundles_post_ra>
// kernel: tpu_custom_call.1
= control target key start
LH: loop header
LB: loop body
LE: loop exit
PB: predicated region body
PF: predicated region fallthrough
CT: control target
= control target key end

     0   :  { %15 = vsyncpa [#allocation6], 0  ;;  %s1159_s0 = inlined_call_operand.hbm [shape: f32[16,128], index: 0, kind: input, shape index: {}]   ;;  %s1160_s1 = inlined_call_operand.hbm [shape: f32[128,128], index: 1, kind: input, shape index: {}]   ;;  %s1161_s2 = inlined_call_operand.hbm [shape: f32[128,128], index: 2, kind: input, shape index: {}]   ;;  %s1162_s3 = inlined_call_operand.hbm [shape: f32[128,128], index: 3, kind: input, shape index: {}]   ;;  %s1163_s4 = inlined_call_operand.vmem [shape: f32[1,128], index: 4, kind: input, shape index: {}]   ;;  %s1164_s5 = inlined_call_operand.vmem [shape: f32[1,128], index: 5, kind: input, shape index: {}]   ;;  %s1165_s6 = inlined_call_operand.vmem [shape: f32[1,128], index: 6, kind: input, shape index: {}]   ;;  %s1166_s7 = inlined_call_operand.hbm [shape: bf16[16,128], index: 7, kind: output, shape index: {0}]   ;;  %s1167_s8 = inlined_call_operand.hbm [shape: bf16[16,128], index: 8, kind: output, shape index: {1}]   ;;  %s1168_s9 = inlined_call_operand.hbm [shape: bf16[16,128], index: 9, kind: output, shape index: {2}]  }
   0x1   :  { %16 = vsyncpa [#allocation9], 0 }
   0x2   :  { %17 = vsyncpa [#allocation12], 0 }
   0x3   :  { %18 = vsyncpa [#allocation7], 0 }
   0x4   :  { %19 = vsyncpa [#allocation15], 0  ;;  %s965_s30 = smov [#allocation8]   ;;  %s966_s11 = smov [#allocation5]  }
   0x5   :  { %s37_s10 = sshll.u32 %s965_s30, 4  ;;  %s25_s12 = sshll.u32 %s966_s11, 4  ;;  %s38_s10 = int_to_ptr.vmem [resolvable:$true] %s37_s10  ;;  %s1026_s12 = int_to_ptr.vmem [resolvable:$true] %s25_s12 }
   0x6   :  { %s801_s15 = scalar_lea.hbm %s1160_s1, 2048 }
   0x7   :  { %p802_p0 = scmp.ne.s32.totalorder %s1160_s1, %s801_s15  ;;  %p805_p1 = scmp.lt.u32.totalorder %s801_s15, %s1160_s1 }
   0x9   :  { %p807_p2 = pnand %p805_p1, %p802_p0 }
   0xb   :  { %810 = shalt.err (!%p807_p2)
}
   0xc   :  { %s811_s20 = scalar_lea.vmem %s38_s10, 2048  ;;  %p816_p4 = scmp.lt.s32.totalorder %s38_s10, %s38_s10 }
   0xd   :  { %p812_p3 = scmp.ne.s32.totalorder %s38_s10, %s811_s20  ;;  %p817_p5 = scmp.lt.s32.totalorder %s811_s20, %s811_s20 }
   0xf   :  { %p818_p6 = por %p817_p5, %p816_p4 }
  0x11   :  { %p819_p7 = pnand %p818_p6, %p812_p3 }
  0x13   :  { %822 = shalt.err (!%p819_p7)
}
  0x14   :  { %s967_s21 = smov 128   ;;  %s968_s22 = smov 8  }
  0x15   :  { %43 = dma.hbm_to_vmem [thread:$0]  %s1160_s1, 2048, %s38_s10, [#allocation9], %s967_s21, %s967_s21, %s968_s22  }
  0x16   :  { %s823_s27 = scalar_lea.hbm %s1159_s0, 256 }
  0x17   :  { %p824_p8 = scmp.ne.s32.totalorder %s1159_s0, %s823_s27  ;;  %p827_p9 = scmp.lt.u32.totalorder %s823_s27, %s1159_s0 }
  0x19   :  { %p829_p10 = pnand %p827_p9, %p824_p8 }
  0x1b   :  { %832 = shalt.err (!%p829_p10)
}
  0x1c   :  { %s833_s13 = scalar_lea.vmem %s1026_s12, 256  ;;  %p838_p12 = scmp.lt.s32.totalorder %s1026_s12, %s1026_s12 }
  0x1d   :  { %p834_p11 = scmp.ne.s32.totalorder %s1026_s12, %s833_s13  ;;  %p839_p13 = scmp.lt.s32.totalorder %s833_s13, %s833_s13 }
  0x1f   :  { %p840_p0 = por %p839_p13, %p838_p12 }
  0x21   :  { %p841_p1 = pnand %p840_p0, %p834_p11 }
  0x23   :  { %844 = shalt.err (!%p841_p1)
}
  0x24   :  { %31 = dma.hbm_to_vmem [thread:$0]  %s1159_s0, 256, %s1026_s12, [#allocation6], %s967_s21, %s967_s21, %s968_s22  }
  0x25   :  { %s969_s14 = smov [#allocation10]   ;;  %s970_s16 = smov [#allocation11]  }
  0x26   :  { %s49_s15 = sshll.u32 %s969_s14, 4  ;;  %s61_s17 = sshll.u32 %s970_s16, 4  ;;  %s50_s15 = int_to_ptr.vmem [resolvable:$true] %s49_s15  ;;  %s1063_s17 = int_to_ptr.vmem [resolvable:$true] %s61_s17 }
  0x27   :  { %s845_s20 = scalar_lea.hbm %s1161_s2, 2048 }
  0x28   :  { %p846_p2 = scmp.ne.s32.totalorder %s1161_s2, %s845_s20  ;;  %p849_p3 = scmp.lt.u32.totalorder %s845_s20, %s1161_s2 }
  0x2a   :  { %p851_p4 = pnand %p849_p3, %p846_p2 }
  0x2c   :  { %854 = shalt.err (!%p851_p4)
}
  0x2d   :  { %s855_s0 = scalar_lea.vmem %s50_s15, 2048  ;;  %p860_p6 = scmp.lt.s32.totalorder %s50_s15, %s50_s15 }
  0x2e   :  { %p856_p5 = scmp.ne.s32.totalorder %s50_s15, %s855_s0  ;;  %p861_p7 = scmp.lt.s32.totalorder %s855_s0, %s855_s0 }
  0x30   :  { %p862_p8 = por %p861_p7, %p860_p6 }
  0x32   :  { %p863_p9 = pnand %p862_p8, %p856_p5 }
  0x34   :  { %866 = shalt.err (!%p863_p9)
}
  0x35   :  { %55 = dma.hbm_to_vmem [thread:$0]  %s1161_s2, 2048, %s50_s15, [#allocation9], %s967_s21, %s967_s21, %s968_s22  }
  0x36   :  { %s867_s30 = scalar_lea.hbm %s1162_s3, 2048 }
  0x37   :  { %p868_p10 = scmp.ne.s32.totalorder %s1162_s3, %s867_s30  ;;  %p871_p11 = scmp.lt.u32.totalorder %s867_s30, %s1162_s3 }
  0x39   :  { %p873_p12 = pnand %p871_p11, %p868_p10 }
  0x3b   :  { %876 = shalt.err (!%p873_p12)
}
  0x3c   :  { %s877_s14 = scalar_lea.vmem %s1063_s17, 2048  ;;  %p882_p0 = scmp.lt.s32.totalorder %s1063_s17, %s1063_s17 }
  0x3d   :  { %p878_p13 = scmp.ne.s32.totalorder %s1063_s17, %s877_s14  ;;  %p883_p1 = scmp.lt.s32.totalorder %s877_s14, %s877_s14 }
  0x3f   :  { %p884_p2 = por %p883_p1, %p882_p0 }
  0x41   :  { %p885_p3 = pnand %p884_p2, %p878_p13 }
  0x43   :  { %888 = shalt.err (!%p885_p3)
}
  0x44   :  { %67 = dma.hbm_to_vmem [thread:$0]  %s1162_s3, 2048, %s1063_s17, [#allocation12], %s967_s21, %s967_s21, %s968_s22  }
  0x45   :  { %955 = dma.done.wait [#allocation6], 256  }
  0x46   :  { %956 = vsyncadd [#allocation6], 4294967040 }
  0x47   :  { %957 = dma.done.wait [#allocation9], 4096  }
  0x48   :  { %958 = vsyncadd [#allocation9], 4294963200 }
  0x49   :  { %959 = dma.done.wait [#allocation12], 2048  }
  0x4a   :  { %960 = vsyncadd [#allocation12], 4294965248  ;;  %v100_v0 = vld [vmem:[#allocation8] sm:$0xff]  ;;  %v101_v1 = vld [vmem:[#allocation8 + $0x8] sm:$0xff]  ;;  %s971_s22 = smov [#allocation13]   ;;  %s972_s19 = smov [#allocation14]  }
  0x4b   :  { %v102_v2 = vld [vmem:[#allocation8 + $0x10] sm:$0xff]  ;;  %v694_v3 = vpack.c.bf16 %v101_v1, %v100_v0  ;;  %v103_v4 = vld [vmem:[#allocation8 + $0x18] sm:$0xff]  ;;  %v104_v6 = vld [vmem:[#allocation8 + $0x20] sm:$0xff]  ;;  %s460_s16 = sshll.u32 %s971_s22, 4  ;;  %s472_s20 = sshll.u32 %s972_s19, 4  ;;  %s461_s16 = int_to_ptr.vmem [resolvable:$true] %s460_s16  ;;  %s473_s20 = int_to_ptr.vmem [resolvable:$true] %s472_s20 }
  0x4c   :  { %v698_v5 = vpack.c.bf16 %v103_v4, %v102_v2  ;;  %v105_v7 = vld [vmem:[#allocation8 + $0x28] sm:$0xff]  ;;  %v197_v9 = vld [vmem:[#allocation10] sm:$0xff]  ;;  %v106_v11 = vld [vmem:[#allocation8 + $0x30] sm:$0xff]  ;;  %p894_p5 = scmp.lt.s32.totalorder %s461_s16, %s461_s16 }
  0x4d   :  { %695 = vmatprep.subr.bf16.mxu0 %v694_v3  ;;  %v702_v8 = vpack.c.bf16 %v105_v7, %v104_v6  ;;  %v198_v10 = vld [vmem:[#allocation10 + $0x8] sm:$0xff]  ;;  %v107_v12 = vld [vmem:[#allocation8 + $0x38] sm:$0xff]  ;;  %v1100_v14 = vld [vmem:[#allocation5] sm:$0xff] }
  0x4e   :  { %697 = vmatpush3.bf16.msra.mxu0 %v694_v3  ;;  %v726_v13 = vpack.c.bf16 %v198_v10, %v197_v9  ;;  %621 = vmatprep.mubr.f32.mxu0 %v1100_v14  ;;  %v199_v15 = vld [vmem:[#allocation10 + $0x10] sm:$0xff]  ;;  %v200_v16 = vld [vmem:[#allocation10 + $0x18] sm:$0xff]  ;;  %v201_v18 = vld [vmem:[#allocation10 + $0x20] sm:$0xff]  ;;  %v706_v19 = vpack.c.bf16 %v107_v12, %v106_v11 }
  0x4f   :  { %699 = vmatprep.subr.bf16.mxu0 %v698_v5  ;;  %656 = vmatprep.mubr.f32.mxu1 %v1100_v14  ;;  %v730_v17 = vpack.c.bf16 %v200_v16, %v199_v15  ;;  %v202_v20 = vld [vmem:[#allocation10 + $0x28] sm:$0xff]  ;;  %v108_v21 = vld [vmem:[#allocation8 + $0x40] sm:$0xff]  ;;  %v203_v24 = vld [vmem:[#allocation10 + $0x30] sm:$0xff] }
  0x50   :  { %727 = vmatprep.subr.bf16.mxu1 %v726_v13  ;;  %v109_v22 = vld [vmem:[#allocation8 + $0x48] sm:$0xff]  ;;  %v734_v23 = vpack.c.bf16 %v202_v20, %v201_v18  ;;  %v204_v25 = vld [vmem:[#allocation10 + $0x38] sm:$0xff]  ;;  %v110_v27 = vld [vmem:[#allocation8 + $0x50] sm:$0xff] }
  0x51   :  { %729 = vmatpush3.bf16.msra.mxu1 %v726_v13  ;;  %v710_v26 = vpack.c.bf16 %v109_v22, %v108_v21  ;;  %v111_v28 = vld [vmem:[#allocation8 + $0x58] sm:$0xff]  ;;  %v738_v29 = vpack.c.bf16 %v204_v25, %v203_v24  ;;  %v205_v30 = vld [vmem:[#allocation10 + $0x40] sm:$0xff]  ;;  %v206_v31 = vld [vmem:[#allocation10 + $0x48] sm:$0xff] }
  0x52   :  { %701 = vmatpush3.bf16.msra.mxu0 %v698_v5  ;;  %731 = vmatprep.subr.bf16.mxu1 %v730_v17  ;;  %v714_v32 = vpack.c.bf16 %v111_v28, %v110_v27  ;;  %v112_v33 = vld [vmem:[#allocation8 + $0x60] sm:$0xff]  ;;  %v113_v34 = vld [vmem:[#allocation8 + $0x68] sm:$0xff]  ;;  %v742_v35 = vpack.c.bf16 %v206_v31, %v205_v30  ;;  %v207_v36 = vld [vmem:[#allocation10 + $0x50] sm:$0xff] }
  0x53   :  { %703 = vmatprep.subr.bf16.mxu0 %v702_v8  ;;  %v208_v37 = vld [vmem:[#allocation10 + $0x58] sm:$0xff]  ;;  %v718_v38 = vpack.c.bf16 %v113_v34, %v112_v33  ;;  %v114_v39 = vld [vmem:[#allocation8 + $0x70] sm:$0xff]  ;;  %v209_v42 = vld [vmem:[#allocation10 + $0x60] sm:$0xff] }
  0x54   :  { %v115_v40 = vld [vmem:[#allocation8 + $0x78] sm:$0xff]  ;;  %v746_v41 = vpack.c.bf16 %v208_v37, %v207_v36  ;;  %v210_v43 = vld [vmem:[#allocation10 + $0x68] sm:$0xff]  ;;  %v294_v45 = vld [vmem:[#allocation11] sm:$0xff] }
  0x55   :  { %733 = vmatpush3.bf16.msra.mxu1 %v730_v17  ;;  %v722_v44 = vpack.c.bf16 %v115_v40, %v114_v39  ;;  %v295_v46 = vld [vmem:[#allocation11 + $0x8] sm:$0xff]  ;;  %v750_v47 = vpack.c.bf16 %v210_v43, %v209_v42  ;;  %v211_v48 = vld [vmem:[#allocation10 + $0x70] sm:$0xff]  ;;  %v212_v49 = vld [vmem:[#allocation10 + $0x78] sm:$0xff] }
  0x56   :  { %705 = vmatpush3.bf16.msra.mxu0 %v702_v8  ;;  %735 = vmatprep.subr.bf16.mxu1 %v734_v23  ;;  %v758_v50 = vpack.c.bf16 %v295_v46, %v294_v45  ;;  %v296_v51 = vld [vmem:[#allocation11 + $0x10] sm:$0xff]  ;;  %v297_v52 = vld [vmem:[#allocation11 + $0x18] sm:$0xff]  ;;  %v754_v53 = vpack.c.bf16 %v212_v49, %v211_v48  ;;  %v298_v56 = vld [vmem:[#allocation11 + $0x20] sm:$0xff] }
  0x57   :  { %707 = vmatprep.subr.bf16.mxu0 %v706_v19  ;;  %v97_v54 = vld [vmem:[#allocation5 + $0x8] sm:$0xff]  ;;  %v762_v55 = vpack.c.bf16 %v297_v52, %v296_v51  ;;  %v299_v57 = vld [vmem:[#allocation11 + $0x28] sm:$0xff]  ;;  %v300_v59 = vld [vmem:[#allocation11 + $0x30] sm:$0xff] }
  0x58   :  { %v766_v58 = vpack.c.bf16 %v299_v57, %v298_v56  ;;  %v301_v60 = vld [vmem:[#allocation11 + $0x38] sm:$0xff]  ;;  %v302_v62 = vld [vmem:[#allocation11 + $0x40] sm:$0xff]  ;;  %v303_v63 = vld [vmem:[#allocation11 + $0x48] sm:$0xff] }
  0x59   :  { %737 = vmatpush3.bf16.msra.mxu1 %v734_v23  ;;  %v770_v61 = vpack.c.bf16 %v301_v60, %v300_v59  ;;  %v774_v0 = vpack.c.bf16 %v303_v63, %v302_v62  ;;  %v304_v1 = vld [vmem:[#allocation11 + $0x50] sm:$0xff]  ;;  %v305_v2 = vld [vmem:[#allocation11 + $0x58] sm:$0xff]  ;;  %v306_v4 = vld [vmem:[#allocation11 + $0x60] sm:$0xff] }
  0x5a   :  { %709 = vmatpush3.bf16.msra.mxu0 %v706_v19  ;;  %739 = vmatprep.subr.bf16.mxu1 %v738_v29  ;;  %v778_v3 = vpack.c.bf16 %v305_v2, %v304_v1  ;;  %v307_v5 = vld [vmem:[#allocation11 + $0x68] sm:$0xff]  ;;  %v308_v7 = vld [vmem:[#allocation11 + $0x70] sm:$0xff]  ;;  %v309_v8 = vld [vmem:[#allocation11 + $0x78] sm:$0xff] }
  0x5b   :  { %711 = vmatprep.subr.bf16.mxu0 %v710_v26  ;;  %v782_v6 = vpack.c.bf16 %v307_v5, %v306_v4  ;;  %v786_v9 = vpack.c.bf16 %v309_v8, %v308_v7  ;;  %v505_v10 = vld [vmem:[%s1163_s4] ss:$0 sm:$0xff]  ;;  %s889_s4 = scalar_lea.vmem %s461_s16, 128 }
  0x5c   :  { %v508_v15 = vld [vmem:[%s1164_s5] ss:$0 sm:$0xff]  ;;  %p890_p4 = scmp.ne.s32.totalorder %s461_s16, %s889_s4  ;;  %p895_p6 = scmp.lt.s32.totalorder %s889_s4, %s889_s4 }
  0x5d   :  { %741 = vmatpush3.bf16.msra.mxu1 %v738_v29 }
  0x5e   :  { %713 = vmatpush3.bf16.msra.mxu0 %v710_v26  ;;  %743 = vmatprep.subr.bf16.mxu1 %v742_v35  ;;  %p896_p7 = por %p895_p6, %p894_p5 }
  0x5f   :  { %715 = vmatprep.subr.bf16.mxu0 %v714_v32 }
  0x60   :  { %p897_p8 = pnand %p896_p7, %p890_p4 }
  0x61   :  { %745 = vmatpush3.bf16.msra.mxu1 %v742_v35 }
  0x62   :  { %717 = vmatpush3.bf16.msra.mxu0 %v714_v32  ;;  %747 = vmatprep.subr.bf16.mxu1 %v746_v41 }
  0x63   :  { %719 = vmatprep.subr.bf16.mxu0 %v718_v38 }
  0x65   :  { %749 = vmatpush3.bf16.msra.mxu1 %v746_v41 }
  0x66   :  { %721 = vmatpush3.bf16.msra.mxu0 %v718_v38  ;;  %751 = vmatprep.subr.bf16.mxu1 %v750_v47 }
  0x67   :  { %723 = vmatprep.subr.bf16.mxu0 %v722_v44 }
  0x69   :  { %753 = vmatpush3.bf16.msra.mxu1 %v750_v47 }
  0x6a   :  { %725 = vmatpush3.bf16.msra.mxu0 %v722_v44  ;;  %755 = vmatprep.subr.bf16.mxu1 %v754_v53 }
  0x6b   :  { %759 = vmatprep.subr.bf16.mxu0 %v758_v50 }
  0x6d   :  { %622 = vmatmul.mubr.f32.vlgmr.msra.gmra.mrb[0].mxu0 %v97_v54  ;;  %757 = vmatpush3.bf16.msra.mxu1 %v754_v53 }
  0x6e   :  { %761 = vmatpush3.bf16.msra.mxu0 %v758_v50  ;;  %691 = vmatprep.mubr.f32.mxu0 %v1100_v14 }
  0x6f   :  { %763 = vmatprep.subr.bf16.mxu0 %v762_v55 }
  0x70   :  { %657 = vmatmul.mubr.f32.vlgmr.msra.gmra.mrb[0].mxu1 %v97_v54 }
  0x72   :  { %765 = vmatpush3.bf16.msra.mxu0 %v762_v55 }
  0x73   :  { %767 = vmatprep.subr.bf16.mxu0 %v766_v58 }
  0x76   :  { %769 = vmatpush3.bf16.msra.mxu0 %v766_v58 }
  0x77   :  { %771 = vmatprep.subr.bf16.mxu0 %v770_v61 }
  0x7a   :  { %773 = vmatpush3.bf16.msra.mxu0 %v770_v61 }
  0x7b   :  { %775 = vmatprep.subr.bf16.mxu0 %v774_v0 }
  0x7e   :  { %777 = vmatpush3.bf16.msra.mxu0 %v774_v0 }
  0x7f   :  { %779 = vmatprep.subr.bf16.mxu0 %v778_v3 }
  0x82   :  { %781 = vmatpush3.bf16.msra.mxu0 %v778_v3 }
  0x83   :  { %783 = vmatprep.subr.bf16.mxu0 %v782_v6 }
  0x86   :  { %785 = vmatpush3.bf16.msra.mxu0 %v782_v6 }
  0x87   :  { %787 = vmatprep.subr.bf16.mxu0 %v786_v9 }
  0x8a   :  { %789 = vmatpush3.bf16.msra.mxu0 %v786_v9 }
  0x8d   :  { %692 = vmatmul.mubr.f32.vlgmr.msra.gmra.mrb[2].mxu0 %v97_v54 }
 0x140   :  { %v623_v11 = vpop.f32.mrb[0].mxu0 }
 0x141   :  { %v402_v12 = vadd.f32 %v623_v11, %v505_v10  ;;  %v182_v13 = vpop.f32.mrb[1].mxu0 }
 0x142   :  { %v401_v14 = vadd.f32 %v505_v10, %v182_v13 }
 0x143   :  { %v658_v17 = vpop.f32.mrb[0].mxu1 }
 0x144   :  { %v523_v16 = vpack.c.bf16 %v402_v12, %v401_v14  ;;  %v423_v18 = vadd.f32 %v658_v17, %v508_v15  ;;  %v279_v19 = vpop.f32.mrb[1].mxu1 }
 0x145   :  { %v422_v20 = vadd.f32 %v508_v15, %v279_v19 }
 0x146   :  { %524 = vst [vmem:[#allocation13] sm:$0xff] %v523_v16  }
 0x147   :  { %900 = shalt.err (!%p897_p8)
}
 0x148   :  { %s901_s5 = scalar_lea.hbm %s1166_s7, 128 }
 0x149   :  { %p902_p9 = scmp.ne.s32.totalorder %s1166_s7, %s901_s5  ;;  %p905_p10 = scmp.lt.u32.totalorder %s901_s5, %s1166_s7 }
 0x14b   :  { %p907_p11 = pnand %p905_p10, %p902_p9 }
 0x14d   :  { %910 = shalt.err (!%p907_p11)
}
 0x14e   :  { %s973_s27 = smov 64   ;;  %s974_s28 = smov 4   ;;  %v528_v21 = vpack.c.bf16 %v423_v18, %v422_v20 }
 0x14f   :  { %466 = dma.vmem_to_hbm [thread:$0]  %s461_s16, 128, %s1166_s7, [#allocation7], %s973_s27, %s973_s27, %s974_s28  }
 0x150   :  { %529 = vst [vmem:[#allocation14] sm:$0xff] %v528_v21   ;;  %s911_s11 = scalar_lea.vmem %s473_s20, 128  ;;  %p916_p13 = scmp.lt.s32.totalorder %s473_s20, %s473_s20 }
 0x151   :  { %p912_p12 = scmp.ne.s32.totalorder %s473_s20, %s911_s11  ;;  %p917_p0 = scmp.lt.s32.totalorder %s911_s11, %s911_s11 }
 0x153   :  { %p918_p1 = por %p917_p0, %p916_p13 }
 0x155   :  { %p919_p2 = pnand %p918_p1, %p912_p12 }
 0x157   :  { %922 = shalt.err (!%p919_p2)
}
 0x158   :  { %s923_s10 = scalar_lea.hbm %s1167_s8, 128 }
 0x159   :  { %p924_p3 = scmp.ne.s32.totalorder %s1167_s8, %s923_s10  ;;  %p927_p4 = scmp.lt.u32.totalorder %s923_s10, %s1167_s8 }
 0x15b   :  { %p929_p5 = pnand %p927_p4, %p924_p3 }
 0x15d   :  { %932 = shalt.err (!%p929_p5)
}
 0x15e   :  { %478 = dma.vmem_to_hbm [thread:$0]  %s473_s20, 128, %s1167_s8, [#allocation15], %s973_s27, %s973_s27, %s974_s28  }
 0x15f   :  { %v511_v22 = vld [vmem:[%s1165_s6] ss:$0 sm:$0xff]  ;;  %s975_s17 = smov [#allocation16]  }
 0x160   :  { %v693_v23 = vpop.f32.mrb[2].mxu0  ;;  %s484_s18 = sshll.u32 %s975_s17, 4  ;;  %s485_s18 = int_to_ptr.vmem [resolvable:$true] %s484_s18 }
 0x161   :  { %v444_v24 = vadd.f32 %v693_v23, %v511_v22  ;;  %v376_v25 = vpop.f32.mrb[3].mxu0  ;;  %s933_s19 = scalar_lea.vmem %s485_s18, 128  ;;  %p938_p7 = scmp.lt.s32.totalorder %s485_s18, %s485_s18 }
 0x162   :  { %v443_v26 = vadd.f32 %v511_v22, %v376_v25  ;;  %p934_p6 = scmp.ne.s32.totalorder %s485_s18, %s933_s19  ;;  %p939_p8 = scmp.lt.s32.totalorder %s933_s19, %s933_s19 }
 0x164   :  { %v533_v27 = vpack.c.bf16 %v444_v24, %v443_v26  ;;  %p940_p9 = por %p939_p8, %p938_p7 }
 0x166   :  { %534 = vst [vmem:[#allocation16] sm:$0xff] %v533_v27   ;;  %p941_p10 = pnand %p940_p9, %p934_p6 }
 0x168   :  { %944 = shalt.err (!%p941_p10)
}
 0x169   :  { %s945_s6 = scalar_lea.hbm %s1168_s9, 128 }
 0x16a   :  { %p946_p11 = scmp.ne.s32.totalorder %s1168_s9, %s945_s6  ;;  %p949_p12 = scmp.lt.u32.totalorder %s945_s6, %s1168_s9 }
 0x16c   :  { %p951_p13 = pnand %p949_p12, %p946_p11 }
 0x16e   :  { %954 = shalt.err (!%p951_p13)
}
 0x16f   :  { %490 = dma.vmem_to_hbm [thread:$0]  %s485_s18, 128, %s1168_s9, [#allocation15], %s973_s27, %s973_s27, %s974_s28  }
 0x170   :  { %961 = dma.done.wait [#allocation7], 128  }
 0x171   :  { %962 = vsyncadd [#allocation7], 4294967168 }
 0x172   :  { %963 = dma.done.wait [#allocation15], 256  }
 0x173   :  { %964 = vsyncadd [#allocation15], 4294967040 }
 0x174   :  { %500 = vsyncpa [#allocation6], 1 }
 0x175   :  { %501 = vsyncpa [#allocation9], 1 }
 0x176   :  { %502 = vsyncpa [#allocation12], 1 }
 0x177   :  { %503 = vsyncpa [#allocation7], 1 }
 0x178   :  { %504 = vsyncpa [#allocation15], 1 }

</bundles_post_ra>
